<compile_context>
chip_gen: v7x
topology: tpu7x:2x2x1
jax: 0.10.0
libtpu: 0.0.40
codegen_flags: <defaults>
</compile_context>

<pallas_src>
import jax
import jax.numpy as jnp
from jax.experimental import pallas as pl
from jax.experimental.pallas import tpu as pltpu

# The three fixed 3x3 kernels from TestConvolution.get_kernels()
KERNELS = (
    ((1.0, 1.0, 1.0), (-1.0, -1.0, -1.0), (0.0, 0.0, 0.0)),
    ((1.0, -1.0, 0.0), (1.0, -1.0, 0.0), (1.0, -1.0, 0.0)),
    ((1.2, 1.2, -1.0), (1.2, 1.2, -1.0), (-1.0, -1.0, -1.0)),
)

_BUDGET_CACHE = None


def _budgets():
    """(block_bytes_budget, vmem_limit_bytes), generation-gated.

    The block budget is compared against 2*(in+out) blocks + hplane temps, i.e.
    double-buffering and body temporaries are counted, per the review.
    """
    global _BUDGET_CACHE
    if _BUDGET_CACHE is not None:
        return _BUDGET_CACHE
    cap = None
    try:
        cap = getattr(pltpu.get_tpu_info(), "vmem_capacity_bytes", None)
    except Exception:
        cap = None
    if cap is not None and cap >= 100 * 1024 * 1024:
        # v5e / v6e: 128 MiB physical VMEM -> bigger blocks, fewer grid steps.
        _BUDGET_CACHE = (24 * 1024 * 1024, 80 * 1024 * 1024)
    else:
        # v7x (64 MiB physical) or unknown: stay conservative.
        _BUDGET_CACHE = (10 * 1024 * 1024, 40 * 1024 * 1024)
    return _BUDGET_CACHE


def _round_up(v, m):
    return ((v + m - 1) // m) * m


def _dedup_kernel_rows(weights):
    """Factor the 3x3 kernel into unique horizontal rows + per-row scales.

    Returns (unique_rows, plan) where plan[dy] is None (all-zero row) or
    (uid, scale) such that weights[dy] == scale * unique_rows[uid].
    """
    unique, plan = [], []
    for row in (tuple(r) for r in weights):
        if all(wv == 0.0 for wv in row):
            plan.append(None)
            continue
        match = None
        for uid, u in enumerate(unique):
            scale, ok = None, True
            for a, b in zip(row, u):
                if b == 0.0:
                    if a != 0.0:
                        ok = False
                        break
                else:
                    s = a / b
                    if scale is None:
                        scale = s
                    elif abs(s - scale) > 1e-12:
                        ok = False
                        break
            if ok and scale is not None:
                match = (uid, scale)
                break
        if match is None:
            unique.append(row)
            plan.append((len(unique) - 1, 1.0))
        else:
            plan.append(match)
    return unique, plan


def _make_conv3x3_body(unique, plan, h_axis, w_axis):
    """Pallas body: 3x3 valid conv (cross-correlation) with static weights.

    h_axis / w_axis select which block axes carry image rows / columns so the
    same body serves the (TB, H, W) and (H, W, N-lanes) layouts.
    """
    # dx's actually used by any unique row (static at trace time).
    needed_dx = sorted({dx for row in unique for dx in range(3) if row[dx] != 0.0})

    def body(x_ref, o_ref):
        x = x_ref[...]
        ho = o_ref.shape[h_axis]
        wo = o_ref.shape[w_axis]

        def window(arr, axis, off, size):
            idx = [slice(None)] * arr.ndim
            idx[axis] = slice(off, off + size)
            return arr[tuple(idx)]

        # Hoisted dx-shifted windows, computed once and shared across unique
        # kernel rows (review: halves shifted-load / XLU pressure on kernel 2).
        xs = {dx: window(x, w_axis, dx, wo) for dx in needed_dx}

        # Horizontal pass: one plane per unique kernel row (shared across dy).
        hplanes = []
        for row in unique:
            acc = None
            for dx in needed_dx:
                wgt = row[dx]
                if wgt == 0.0:
                    continue
                term = xs[dx]
                if wgt == 1.0:
                    acc = term if acc is None else acc + term
                elif wgt == -1.0:
                    acc = -term if acc is None else acc - term
                else:
                    t = wgt * term
                    acc = t if acc is None else acc + t
            hplanes.append(acc)

        # Vertical combine of the (shifted) shared horizontal planes.
        out = None
        for dy in range(3):
            p = plan[dy]
            if p is None:
                continue
            uid, scale = p
            term = window(hplanes[uid], h_axis, dy, ho)
            if scale == 1.0:
                out = term if out is None else out + term
            elif scale == -1.0:
                out = -term if out is None else out - term
            else:
                t = scale * term
                out = t if out is None else out + t
        o_ref[...] = out

    return body


def _conv_batched(x, unique, plan, h, w, ho, wo):
    """Grid over blocks of TB whole images: (TB, H, W) -> (TB, HO, WO)."""
    n = x.shape[0]
    block_budget, vmem_limit = _budgets()
    n_planes = len(unique)
    # Per-image VMEM footprint: double-buffered in + out blocks plus the
    # hplane temporaries the body materializes (last two dims (8,128)-padded).
    per_image = (2 * _round_up(h, 8) * _round_up(w, 128)
                 + 2 * _round_up(ho, 8) * _round_up(wo, 128)
                 + n_planes * _round_up(h, 8) * _round_up(wo, 128)) * 4
    tb = max(1, block_budget // per_image)
    tb = min(tb, n)
    if n >= 2:
        # Target >=8 grid steps (>=2 for tiny batches): keeps both v7x TCs busy
        # and gives the pipeline room to hide DMA behind compute/writeback.
        tb = min(tb, pl.cdiv(n, min(n, 8)))
    # Rebalance: same number of steps, least work wasted in the masked
    # trailing block (no jnp.pad / extra HBM pass).
    steps = pl.cdiv(n, tb)
    tb = pl.cdiv(n, steps)
    # TODO(synk): add an H-tiled path with a 2-row input halo for images whose
    # full (H, W) plane exceeds the per-block VMEM budget even at tb == 1.

    return pl.pallas_call(
        _make_conv3x3_body(unique, plan, h_axis=1, w_axis=2),
        out_shape=jax.ShapeDtypeStruct((n, ho, wo), jnp.float32),
        grid_spec=pltpu.PrefetchScalarGridSpec(
            num_scalar_prefetch=0,
            grid=(steps,),
            in_specs=[pl.BlockSpec((tb, h, w), lambda b: (b, 0, 0))],
            out_specs=pl.BlockSpec((tb, ho, wo), lambda b: (b, 0, 0)),
        ),
        compiler_params=pltpu.CompilerParams(
            dimension_semantics=("parallel",),
            vmem_limit_bytes=vmem_limit,
        ),
    )(x)


def _conv_lane_packed(x, unique, plan, h, w, ho, wo):
    """Small-image path: relayout to (H, W, N) so batch fills the 128 lanes.

    dx shifts become sublane slices and dy shifts leading-axis slices; the
    output block's last dim is lane-dense -> unmasked stores.
    """
    n = x.shape[0]
    block_budget, vmem_limit = _budgets()
    n_planes = len(unique)
    # VMEM per 128-lane batch group: double-buffered in + out blocks plus
    # hplane temporaries (sublane dims padded to 8).
    group = (2 * h * _round_up(w, 8)
             + 2 * ho * _round_up(wo, 8)
             + n_planes * h * _round_up(wo, 8)) * 128 * 4
    tbn = max(1, block_budget // group) * 128
    if n >= 8 * 128:
        tbn = min(tbn, _round_up(pl.cdiv(n, 8), 128))   # >=8 steps (v7x 2 TCs)
    elif n >= 2 * 128:
        tbn = min(tbn, _round_up(pl.cdiv(n, 2), 128))   # >=2 steps
    if tbn >= n:
        tbn = n  # single block spanning the full (possibly non-128) batch dim

    # TODO(synk): fuse this relayout into the kernel (read natural (tbn, h, w)
    # blocks + in-kernel transpose) to drop one full HBM pass over x.
    xt = jnp.transpose(x, (1, 2, 0))  # (H, W, N)

    out_t = pl.pallas_call(
        _make_conv3x3_body(unique, plan, h_axis=0, w_axis=1),
        out_shape=jax.ShapeDtypeStruct((ho, wo, n), jnp.float32),
        grid_spec=pltpu.PrefetchScalarGridSpec(
            num_scalar_prefetch=0,
            grid=(pl.cdiv(n, tbn),),
            in_specs=[pl.BlockSpec((h, w, tbn), lambda b: (0, 0, b))],
            out_specs=pl.BlockSpec((ho, wo, tbn), lambda b: (0, 0, b)),
        ),
        compiler_params=pltpu.CompilerParams(
            dimension_semantics=("parallel",),
            vmem_limit_bytes=vmem_limit,
        ),
    )(xt)
    return jnp.transpose(out_t, (2, 0, 1))


def test_convolution_forward(data, i):
    """Equivalent of TestConvolution.forward(data, i).

    data: (N, 1, H, W) float array (NCHW, single channel)
    i:    Python int in {0, 1, 2} selecting the fixed kernel
    returns: (N, 1, H-2, W-2) float32
    """
    data = jnp.asarray(data, jnp.float32)
    n, c, h, w = data.shape
    assert c == 1, "TestConvolution uses a single input channel"
    x = data.reshape(n, h, w)
    ho, wo = h - 2, w - 2
    unique, plan = _dedup_kernel_rows(KERNELS[i])

    if w < 128 and n >= 64:
        out = _conv_lane_packed(x, unique, plan, h, w, ho, wo)
    else:
        out = _conv_batched(x, unique, plan, h, w, ho, wo)
    return out.reshape(n, 1, ho, wo)


def _reference_conv(data, i):
    """Pure-JAX reference (lax.conv) for correctness checking."""
    k = jnp.array(KERNELS[i], jnp.float32).reshape(1, 1, 3, 3)
    return jax.lax.conv_general_dilated(
        jnp.asarray(data, jnp.float32), k,
        window_strides=(1, 1), padding="VALID",
        dimension_numbers=("NCHW", "OIHW", "NCHW"))


if __name__ == "__main__":
    key = jax.random.PRNGKey(0)
    H = W = 16
    # N=2   -> batched (TB, H, W) path, 2 grid steps
    # N=130 -> lane-packed (H, W, N) path, single full-batch block (non-128 N)
    # N=256 -> lane-packed path, 2 blocks of 128 lanes (lane-dense stores)
    for N in (2, 130, 256):
        data = jax.random.normal(key, (N, 1, H, W), dtype=jnp.float32)
        for i in range(3):
            out = jax.block_until_ready(test_convolution_forward(data, i))
            ref = _reference_conv(data, i)
            assert out.shape == (N, 1, H - 2, W - 2), out.shape
            assert jnp.allclose(out, ref, atol=1e-5, rtol=1e-5), (
                f"mismatch on N={N} kernel {i}")
    print("KERNEL_OK")
</pallas_src>

<mosaic_0001>
module attributes {stable_mosaic.version = 11 : i64} {
  func.func @body(%arg0: i32, %arg1: memref<1x16x16xf32, #tpu.memory_space<vmem>>, %arg2: memref<1x14x14xf32, #tpu.memory_space<vmem>>) attributes {dimension_semantics = [#tpu.dimension_semantics<parallel>], iteration_bounds = array<i64: 2>, scalar_prefetch = 0 : i64, scratch_operands = 0 : i64, tpu.core_type = #tpu.core_type<tc>, window_params = [{transform_indices = @transform_0, window_bounds = array<i64: 1, 16, 16>}, {transform_indices = @transform_1, window_bounds = array<i64: 1, 14, 14>}]} {
    %c0 = arith.constant 0 : index
    %c0_0 = arith.constant 0 : index
    %c0_1 = arith.constant 0 : index
    %0 = vector.load %arg1[%c0, %c0_0, %c0_1] : memref<1x16x16xf32, #tpu.memory_space<vmem>>, vector<1x16x16xf32>
    %1 = vector.extract_strided_slice %0 {offsets = [0, 0, 0], sizes = [1, 16, 14], strides = [1, 1, 1]} : vector<1x16x16xf32> to vector<1x16x14xf32>
    %2 = vector.extract_strided_slice %0 {offsets = [0, 0, 1], sizes = [1, 16, 14], strides = [1, 1, 1]} : vector<1x16x16xf32> to vector<1x16x14xf32>
    %3 = vector.extract_strided_slice %0 {offsets = [0, 0, 2], sizes = [1, 16, 14], strides = [1, 1, 1]} : vector<1x16x16xf32> to vector<1x16x14xf32>
    %4 = arith.addf %1, %2 : vector<1x16x14xf32>
    %5 = arith.addf %4, %3 : vector<1x16x14xf32>
    %6 = vector.extract_strided_slice %5 {offsets = [0, 0, 0], sizes = [1, 14, 14], strides = [1, 1, 1]} : vector<1x16x14xf32> to vector<1x14x14xf32>
    %7 = vector.extract_strided_slice %5 {offsets = [0, 1, 0], sizes = [1, 14, 14], strides = [1, 1, 1]} : vector<1x16x14xf32> to vector<1x14x14xf32>
    %8 = arith.subf %6, %7 : vector<1x14x14xf32>
    %c0_2 = arith.constant 0 : index
    %c0_3 = arith.constant 0 : index
    %c0_4 = arith.constant 0 : index
    %9 = vector.load %arg2[%c0_2, %c0_3, %c0_4] : memref<1x14x14xf32, #tpu.memory_space<vmem>>, vector<1x14x14xf32>
    tpu.vector_store %arg2[%c0_2, %c0_3, %c0_4], %8 {strides = array<i32>} : memref<1x14x14xf32, #tpu.memory_space<vmem>>, vector<1x14x14xf32>,
    return
  }
  func.func @transform_0(%arg0: i32) -> (i32, i32, i32) {
    %c0_i32 = arith.constant 0 : i32
    %c0_i32_0 = arith.constant 0 : i32
    %c0_i32_1 = arith.constant 0 : i32
    return %arg0, %c0_i32, %c0_i32_0 : i32, i32, i32
  }
  func.func @transform_1(%arg0: i32) -> (i32, i32, i32) {
    %c0_i32 = arith.constant 0 : i32
    %c0_i32_0 = arith.constant 0 : i32
    %c0_i32_1 = arith.constant 0 : i32
    return %arg0, %c0_i32, %c0_i32_0 : i32, i32, i32
  }
}

</mosaic_0001>

<bundles_post_ra>
// kernel: tpu_custom_call.1
= control target key start
LH: loop header
LB: loop body
LE: loop exit
PB: predicated region body
PF: predicated region fallthrough
CT: control target
= control target key end

     0   :  { %6 = vsyncpa [#allocation3], 0  ;;  %s484_s0 = inlined_call_operand.hbm [shape: f32[2,16,16], index: 0, kind: input, shape index: {}]   ;;  %s485_s1 = inlined_call_operand.vmem [shape: f32[2,14,14], index: 1, kind: output, shape index: {}]  }
   0x1   :  { %8 = vsyncpa [#allocation3 + $0x1], 0  ;;  %s376_s6 = smov 0   ;;  %s378_s7 = smov 0  }
   0x2   :  { %s380_s8 = smov 0   ;;  %s382_s9 = smov 0  }
   0x3 LB: > { %s395_s10 = sadd.s32 4294967295, %s359_s9   ;;  %s398_s11 = sadd.s32 1, %s359_s9   ;;  %s359_s9 = sphi %s382_s9, %s492_s9   ;;  %s355_s8 = sphi %s380_s8, %s491_s8   ;;  %s351_s7 = sphi %s378_s7, %s490_s7   ;;  %s347_s6 = sphi %s376_s6, %s489_s6  }
   0x4   : > { %s18_s12 = ssub.s32 %s359_s9, %s398_s11  ;;  %s21_s13 = sadd.s32 1, %s355_s8 }
   0x5   : > { %p19_p0 = scmp.eq.s32.totalorder %s18_s12, 0  ;;  %p28_p1 = scmp.ne.s32.totalorder %s355_s8, %s351_s7 }
   0x6   : > { %p29_p2 = scmp.eq.s32.totalorder %s359_s9, 0  ;;  %p34_p3 = scmp.ne.s32.totalorder %s351_s7, %s347_s6 }
   0x7   : > { %s408_s14 = scalar_select %p19_p0, %s355_s8, %s21_s13  }
   0x8   : > { %p30_p4 = por %p29_p2, %p28_p1  ;;  %p35_p5 = scmp.eq.s32.totalorder %s395_s10, 0 }
   0x9   : > { %p258_p6 = scmp.lt.s32.totalorder %s359_s9, 2  ;;  %s84_s16 = sand.u32 1, %s355_s8  }
   0xa   : > { %p412_p7 = por %p35_p5, %p34_p3  ;;  %s241_s17 = sshll.u32 %s84_s16, 4 }
   0xb   : > { %s250_s18 = sshll.u32 %s359_s9, 8  ;;  %s88_s22 = scalar_lea.vmem [#allocation2], %s241_s17 }
   0xc   : > { %s421_s21 = scalar_lea.hbm %s484_s0, %s250_s18  ;;  %s95_s23 = sshll.u32 %s88_s22, 4  ;;  %s423_s23 = int_to_ptr.vmem [resolvable:$true] %s95_s23 }
   0xd   : > { %p425_p8 = pnand %p258_p6, %p30_p4  ;;  %s430_s25 = scalar_lea.sflag [#allocation3], %s84_s16 }
   0xe   : > { %s295_s26 = scalar_lea.hbm %s421_s21, 256  ;;  %s300_s29 = scalar_lea.hbm %s484_s0, 512 }
   0xf   : > { %p296_p10 = scmp.ne.s32.totalorder %s421_s21, %s295_s26  ;;  %p297_p11 = pneg %p425_p8 }
  0x10   : > { %p301_p0 = scmp.lt.u32.totalorder %s421_s21, %s484_s0  ;;  %p302_p1 = scmp.lt.u32.totalorder %s300_s29, %s295_s26 }
  0x11   : > { %p298_p12 = pnand %p297_p11, %p296_p10  ;;  %p304_p3 = scmp.lt.u32.totalorder %s295_s26, %s421_s21 }
  0x12   : > { %p303_p2 = por %p302_p1, %p301_p0 }
  0x13   : > { %p299_p13 = pneg %p298_p12 }
  0x14   : > { %p305_p4 = por %p304_p3, %p303_p2 }
  0x16   : > { %p306_p5 = pnand %p305_p4, %p299_p13 }
  0x18   : > { %309 = shalt.err (!%p306_p5)
}
  0x19   : > { %s310_s3 = scalar_lea.vmem %s423_s23, 256  ;;  %s361_s4 = smov [#allocation2]  }
  0x1a   : > { %p311_p6 = scmp.ne.s32.totalorder %s423_s23, %s310_s3  ;;  %s315_s5 = sshll.u32 %s361_s4, 4  ;;  %s316_s5 = int_to_ptr.vmem [resolvable:$false] %s315_s5 }
  0x1b   : > { %s317_s6 = scalar_lea.vmem %s316_s5, 512  ;;  %p318_p9 = scmp.lt.s32.totalorder %s423_s23, %s316_s5 }
  0x1c   : > { %p313_p10 = pnand %p311_p6, %p297_p11  ;;  %p319_p0 = scmp.lt.s32.totalorder %s317_s6, %s310_s3 }
  0x1e   : > { %p314_p12 = pneg %p313_p10  ;;  %p320_p1 = por %p319_p0, %p318_p9 }
  0x20   : > { %p321_p2 = pnand %p320_p1, %p314_p12 }
  0x22   : > { %324 = shalt.err (!%p321_p2)
}
  0x23   : > { %s362_s12 = smov 128   ;;  %s363_s13 = smov 8  }
  0x24   : > { %257 = dma.hbm_to_vmem [thread:$0]  (!%p425_p8), %s421_s21, 256, %s423_s23, %s430_s25, %s362_s12, %s362_s12, %s363_s13  }
  0x25   : > { %p103_p11 = scmp.lt.s32.totalorder %s359_s9, 3  ;;  %p488_p13 = scmp.ge.s32.totalorder %s359_s9, 1 }
  0x27   : > { %p104_p3 = pnand %p488_p13, %p103_p11 }
  0x28   : > { %s109_s16 = sand.u32 (!%p104_p3), 1, %s351_s7  }
  0x29   : > { %107 = sbr.rel (%p104_p3) target bundleno = 179 (0xb3), region = 24  ;;  %s245_s17 = sshll.u32 (!%p104_p3), %s109_s16, 4 }
  0x2a   : > { %s110_s18 = scalar_lea.sflag (!%p104_p3), [#allocation3], %s109_s16  ;;  %s113_s19 = scalar_lea.vmem (!%p104_p3), [#allocation2], %s245_s17 }
  0x30   : > { %342 = dma.done.wait (%p412_p7), %s110_s18, 256  }
  0x31   : > { %344 = vsyncadd (%p412_p7), %s110_s18, 4294967040  ;;  %v137_v0 = vld [vmem:[%s113_s19] sm:$0xff]  ;;  %s364_s20 = smov 127   ;;  %s365_s21 = smov 126   ;;  %v138_v1 = vld [vmem:[%s113_s19 + $0x8] sm:$0xff]  ;;  %vm159_vm0 = vcmask 1046528  }
  0x32   : > { %141 = vrot.lane.b32.xlu0 %v137_v0, %s364_s20  ;;  %149 = vrot.lane.b32.xlu1 %v137_v0, %s365_s21  ;;  %p132_p8 = scmp.lt.s32.totalorder %s395_s10, 1  ;;  %vm169_vm1 = vcmask 111616   ;;  %vm167_vm2 = vcmask 113664  }
  0x34   : > { %s494_s10 = smov (!%p132_p8, %s395_s10), 1 }
  0x35   : > { %s251_s9 = sshll.u32 %s494_s10, 4 }
  0x36   : > { %143 = vrot.lane.b32.xlu0 %v138_v1, %s364_s20  ;;  %151 = vrot.lane.b32.xlu1 %v138_v1, %s365_s21  ;;  %s136_s23 = scalar_lea.vmem %s485_s1, %s251_s9 }
  0xa4   : > { %v142_v2 = vpop.permute.xlu0 %141  ;;  %v150_v3 = vpop.permute.xlu1 %149 }
  0xa5   : > { %v147_v4 = vadd.f32 %v142_v2, %v137_v0 }
  0xa7   : > { %v155_v7 = vadd.f32 %v150_v3, %v147_v4 }
  0xa8   : > { %v144_v5 = vpop.permute.xlu0 %143  ;;  %v152_v6 = vpop.permute.xlu1 %151 }
  0xa9   : > { %v148_v8 = vadd.f32 %v144_v5, %v138_v1  ;;  %v160_v10 = vrot.slane %v155_v7, 1 }
  0xab   : > { %v156_v9 = vadd.f32 %v152_v6, %v148_v8 }
  0xad   : > { %v161_v11 = vrot.slane %v156_v9, 1 }
  0xaf   : > { %v162_v12 = vsel %vm159_vm0, %v160_v10, %v161_v11  ;;  %v166_v13 = vsub.f32 %v156_v9, %v161_v11 }
  0xb0   : > { %v165_v14 = vsub.f32 %v155_v7, %v162_v12 }
  0xb1   : > { %170 = vst.msk [vmem:[%s136_s23 + $0x8] sm:$0x3f] %vm169_vm1, %v166_v13 }
  0xb2   : > { %168 = vst.msk [vmem:[%s136_s23] sm:$0xff] %vm167_vm2, %v165_v14 }
  0xb3 PF: > { %p11_p7 = scmp.ge.s32.totalorder %s398_s11, 4   ;;  %s489_s6 = smov %s351_s7 }
  0xb4   : > { %s490_s7 = smov %s355_s8  ;;  %s491_s8 = smov %s408_s14 }
  0xb5   : > { %s492_s9 = smov %s398_s11  ;;  %13 = sbr.rel (!%p11_p7) target bundleno = 3 (0x3), region = 64 }
  0xbc   :  { %192 = vsyncpa [#allocation3], 1 }
  0xbd   :  { %194 = vsyncpa [#allocation3 + $0x1], 1 }

</bundles_post_ra>
